<compile_context>
chip_gen: v7x
topology: tpu7x:2x2x1
jax: 0.10.0
libtpu: 0.0.40
codegen_flags: <defaults>
</compile_context>

<pallas_src>
import functools

import jax
import jax.numpy as jnp
from jax import lax
from jax.experimental import pallas as pl
from jax.experimental.pallas import tpu as pltpu

RANK = 96  # fixed in the PyTorch module


def _round_up(x, m):
    return ((x + m - 1) // m) * m


def _vmem_capacity_bytes():
    try:
        return int(pltpu.get_tpu_info().vmem_capacity_bytes)
    except Exception:
        return 64 * 1024 * 1024  # conservative fallback: assume v7x (64 MiB)


def _vmem_budget_bytes():
    # Leave headroom under physical VMEM: ~48 MiB on v7x, ~96 MiB on v5e/v6e.
    return min((3 * _vmem_capacity_bytes()) // 4, 96 * 1024 * 1024)


def _pick_tile_n(input_dim, n_total, weight_itemsize, *, max_tile_b=512,
                 x_itemsize=4, target_dma_bytes=2 * 1024 * 1024):
    """Lane tile for the fused weight stream.

    Aim for >= ~2 MiB of weight bytes per grid step (per-step overhead is
    ~0.35 us, so small DMAs never reach the HBM roofline), capped at 4096
    lanes, then shrunk in 128-lane steps until the double-buffered working
    set fits the generation-aware VMEM budget.
    """
    budget = _vmem_budget_bytes()
    tn = _round_up(max(1, target_dma_bytes // (input_dim * weight_itemsize)), 128)
    tn = max(512, min(tn, 4096))

    def working_set(t):
        return (2 * input_dim * t * weight_itemsize       # weight double-buffer
                + 2 * max_tile_b * t * 4                   # f32 output double-buffer
                + 2 * max_tile_b * input_dim * x_itemsize  # x double-buffer
                + 2 * t * 4)                               # bias double-buffer

    while tn > 128 and working_set(tn) > budget:
        tn -= 128
    tn = min(tn, _round_up(n_total, 128))
    return int(max(tn, 128))


def _fused_head_kernel(x_ref, w_ref, b_ref, out_ref, *, tile_n, s_end):
    """One lane-dense MXU tile of the fused [S | mean | V] projection.

    y = x @ W_tile + b_tile; softplus is applied only on the single tile that
    contains the S columns (columns [0, s_end) of the packed layout).
    """
    j = pl.program_id(0)  # N is the OUTER grid axis (weights streamed once)

    y = jnp.dot(x_ref[...], w_ref[...], preferred_element_type=jnp.float32)
    y = y + b_ref[...]

    col0 = j * tile_n
    tile_has_s = col0 < s_end  # S always fits in lane-tile 0 (rank=96 < 128)

    @pl.when(tile_has_s)
    def _():
        cols = col0 + lax.broadcasted_iota(jnp.int32, y.shape, 1)
        is_s = cols < s_end
        # Stable softplus, matches torch.nn.functional.softplus (beta=1).
        sp = jnp.maximum(y, 0.0) + jnp.log1p(jnp.exp(-jnp.abs(y)))
        out_ref[...] = jnp.where(is_s, sp, y)

    @pl.when(jnp.logical_not(tile_has_s))
    def _():
        out_ref[...] = y


def pack_params(params, output_dim, rank=RANK, weight_dtype=jnp.bfloat16):
    """One-time packing of the three Linear layers into one lane-dense matrix.

    Layout along the lane axis: [ S(rank) | mean(D_out) | zero-pad to 128 |
    V(D_out*rank) | zero-pad to tile_n ].  Call once at parameter-setup time.
    Default bf16 storage halves the dominant HBM term; pass jnp.float32 if the
    consumer needs full-precision activations (as the demo does for its tight
    allclose check).
    """
    wm, bm, wv, bv, ws, bs = params
    input_dim = wm.shape[0]

    head = rank + output_dim
    head_pad = _round_up(head, 128)
    n_total = head_pad + output_dim * rank

    w_itemsize = jnp.dtype(weight_dtype).itemsize
    tile_n = _pick_tile_n(input_dim, n_total, w_itemsize)
    n_pad = _round_up(n_total, tile_n)

    w_head = jnp.pad(jnp.concatenate([ws, wm], axis=1), ((0, 0), (0, head_pad - head)))
    w_cat = jnp.concatenate([w_head, wv], axis=1)
    w_cat = jnp.pad(w_cat, ((0, 0), (0, n_pad - n_total))).astype(weight_dtype)

    b_head = jnp.pad(jnp.concatenate([bs, bm], axis=1), ((0, 0), (0, head_pad - head)))
    b_cat = jnp.concatenate([b_head, bv], axis=1)
    b_cat = jnp.pad(b_cat, ((0, 0), (0, n_pad - n_total))).astype(jnp.float32)

    return w_cat, b_cat, tile_n, head_pad


def low_rank_mvg_head_forward(x, w_cat, b_cat, *, output_dim, rank=RANK,
                              tile_n, head_pad):
    """Pallas kernel for the fused projection; XLA glue only for the interleave."""
    B, input_dim = x.shape
    n_pad = w_cat.shape[1]
    n_v = output_dim * rank
    s_end = rank  # S occupies the leading [0, rank) columns of the packed layout

    # Cast activations to the weight dtype once (not per tile in the kernel).
    x = x.astype(w_cat.dtype)

    tile_b = B if B <= 512 else 512
    n_tiles = n_pad // tile_n
    b_tiles = pl.cdiv(B, tile_b)
    # N outer / batch inner: each weight tile is DMA'd exactly once and stays
    # resident across the batch sweep; only the small x tile is re-fetched.
    grid = (n_tiles, b_tiles)

    kernel = functools.partial(_fused_head_kernel, tile_n=tile_n, s_end=s_end)

    w_itemsize = w_cat.dtype.itemsize
    x_itemsize = x.dtype.itemsize
    working = (2 * input_dim * tile_n * w_itemsize
               + 2 * tile_b * tile_n * 4
               + 2 * tile_b * input_dim * x_itemsize
               + 2 * tile_n * 4)
    vmem_limit = int(min(max(working + (4 << 20), 32 << 20), _vmem_budget_bytes()))

    flops = 2 * B * input_dim * n_pad
    transcendentals = 2 * tile_b * tile_n * b_tiles  # tile-wide softplus, masked
    bytes_accessed = (x.size * x_itemsize * n_tiles      # x re-streamed per N tile
                      + w_cat.size * w_itemsize           # weights streamed once
                      + b_cat.size * b_cat.dtype.itemsize
                      + B * n_pad * 4)

    y = pl.pallas_call(
        kernel,
        out_shape=jax.ShapeDtypeStruct((B, n_pad), jnp.float32),
        grid=grid,
        in_specs=[
            # x: re-fetched per N tile (tiny), resident across nothing it needn't be.
            pl.BlockSpec((tile_b, input_dim), lambda j, b: (b, 0)),
            # fused weights: constant index along the inner (batch) axis ->
            # streamed from HBM exactly once per N tile.
            pl.BlockSpec((input_dim, tile_n), lambda j, b: (0, j)),
            # fused bias tile rides along with the weight tile.
            pl.BlockSpec((1, tile_n), lambda j, b: (0, j)),
        ],
        out_specs=pl.BlockSpec((tile_b, tile_n), lambda j, b: (b, j)),
        compiler_params=pltpu.CompilerParams(
            dimension_semantics=("parallel", "parallel"),
            vmem_limit_bytes=vmem_limit,
        ),
        cost_estimate=pl.CostEstimate(
            flops=flops,
            transcendentals=transcendentals,
            bytes_accessed=bytes_accessed,
        ),
    )(x, w_cat, b_cat)

    # Layout glue identical to the PyTorch forward (softplus already applied).
    # Packed layout is [S | mean | pad | V], so these are contiguous slices.
    S = y[:, :rank]
    mean = y[:, rank:rank + output_dim]
    V = y[:, head_pad:head_pad + n_v].reshape(B, output_dim, rank)
    S_rep = jnp.broadcast_to(S[:, None, :], (B, output_dim, rank))
    # TODO(synk): this 193-wide (non-128-aligned) interleave stays in XLA; fuse
    # it into the kernel only if the output contract can be padded to 256 lanes
    # or returned un-interleaved.
    return jnp.concatenate([mean[..., None], V, S_rep], axis=-1)


def init_params(key, input_dim, output_dim, rank=RANK):
    """Deterministic init mimicking nn.Linear default U[-1/sqrt(fan_in), 1/sqrt(fan_in)]."""
    keys = jax.random.split(key, 6)

    def linear(kw, kb, fan_in, fan_out):
        bound = 1.0 / float(fan_in) ** 0.5
        w = jax.random.uniform(kw, (fan_in, fan_out), jnp.float32, -bound, bound)
        b = jax.random.uniform(kb, (1, fan_out), jnp.float32, -bound, bound)
        return w, b

    wm, bm = linear(keys[0], keys[1], input_dim, output_dim)
    wv, bv = linear(keys[2], keys[3], input_dim, output_dim * rank)
    ws, bs = linear(keys[4], keys[5], input_dim, rank)
    return wm, bm, wv, bv, ws, bs


def _reference(x, params, output_dim, rank=RANK):
    """Pure-JAX reference of the PyTorch forward for the correctness check."""
    wm, bm, wv, bv, ws, bs = params
    mean = x @ wm + bm
    V = (x @ wv + bv).reshape(x.shape[0], output_dim, rank)
    S = jax.nn.softplus(x @ ws + bs)
    S_rep = jnp.broadcast_to(S[:, None, :], (x.shape[0], output_dim, rank))
    return jnp.concatenate([mean[..., None], V, S_rep], axis=-1)


if __name__ == "__main__":
    batch = 8
    input_dim = 32
    output_dim = 16

    key = jax.random.PRNGKey(0)
    k_x, k_p = jax.random.split(key)

    x = jax.random.normal(k_x, (batch, input_dim), dtype=jnp.float32)
    params = init_params(k_p, input_dim, output_dim, RANK)

    # One-time weight packing.  f32 here so the reference check is tight;
    # production should keep the bf16 default (halves the dominant HBM term).
    w_cat, b_cat, tile_n, head_pad = pack_params(
        params, output_dim, RANK, weight_dtype=jnp.float32
    )

    fwd = jax.jit(
        functools.partial(
            low_rank_mvg_head_forward,
            output_dim=output_dim,
            rank=RANK,
            tile_n=tile_n,
            head_pad=head_pad,
        )
    )

    out = jax.block_until_ready(fwd(x, w_cat, b_cat))
    assert out.shape == (batch, output_dim, 1 + 2 * RANK), out.shape

    ref = jax.block_until_ready(_reference(x, params, output_dim, RANK))
    assert jnp.allclose(out, ref, atol=1e-5, rtol=1e-5), "mismatch vs reference"

    print("KERNEL_OK")
</pallas_src>

<mosaic_0001>
module attributes {stable_mosaic.version = 11 : i64} {
  func.func @_fused_head_kernel(%arg0: i32, %arg1: i32, %arg2: memref<8x32xf32, #tpu.memory_space<vmem>>, %arg3: memref<32x1664xf32, #tpu.memory_space<vmem>>, %arg4: memref<1x1664xf32, #tpu.memory_space<vmem>>, %arg5: memref<8x1664xf32, #tpu.memory_space<vmem>>) attributes {dimension_semantics = [#tpu.dimension_semantics<parallel>, #tpu.dimension_semantics<parallel>], iteration_bounds = array<i64: 1, 1>, scalar_prefetch = 0 : i64, scratch_operands = 0 : i64, tpu.core_type = #tpu.core_type<tc>, window_params = [{transform_indices = @transform_0, window_bounds = array<i64: 8, 32>}, {transform_indices = @transform_1, window_bounds = array<i64: 32, 1664>}, {transform_indices = @transform_2, window_bounds = array<i64: 1, 1664>}, {transform_indices = @transform_3, window_bounds = array<i64: 8, 1664>}]} {
    %c0 = arith.constant 0 : index
    %c0_0 = arith.constant 0 : index
    %0 = vector.load %arg2[%c0, %c0_0] : memref<8x32xf32, #tpu.memory_space<vmem>>, vector<8x32xf32>
    %c0_1 = arith.constant 0 : index
    %c0_2 = arith.constant 0 : index
    %1 = vector.load %arg3[%c0_1, %c0_2] : memref<32x1664xf32, #tpu.memory_space<vmem>>, vector<32x1664xf32>
    %cst = arith.constant dense<0.000000e+00> : vector<8x1664xf32>
    %2 = tpu.matmul %0, %1, %cst {dimension_numbers = #tpu.dot_dimension_numbers<[1], [0], [0], [1], [0, 0, 1, 1], [], []>} : vector<8x32xf32>, vector<32x1664xf32>, vector<8x1664xf32> -> vector<8x1664xf32>
    %c0_3 = arith.constant 0 : index
    %c0_4 = arith.constant 0 : index
    %3 = vector.load %arg4[%c0_3, %c0_4] : memref<1x1664xf32, #tpu.memory_space<vmem>>, vector<1x1664xf32>
    %4 = vector.broadcast %3 : vector<1x1664xf32> to vector<8x1664xf32>
    %5 = arith.addf %2, %4 : vector<8x1664xf32>
    %c1664_i32 = arith.constant 1664 : i32
    %6 = arith.muli %arg0, %c1664_i32 : i32
    %c96_i32 = arith.constant 96 : i32
    %7 = arith.cmpi slt, %6, %c96_i32 : i32
    %8 = arith.extui %7 : i1 to i32
    %c0_i32 = arith.constant 0 : i32
    %9 = arith.cmpi ne, %8, %c0_i32 : i32
    scf.if %9 {
      %13 = tpu.iota {dimensions = array<i32: 1>} : vector<8x1664xi32>
      %14 = vector.broadcast %6 : i32 to vector<8x1664xi32>
      %15 = arith.addi %14, %13 : vector<8x1664xi32>
      %c96_i32_6 = arith.constant 96 : i32
      %16 = vector.broadcast %c96_i32_6 : i32 to vector<8x1664xi32>
      %17 = arith.cmpi slt, %15, %16 : vector<8x1664xi32>
      %cst_7 = arith.constant 0.000000e+00 : f32
      %18 = vector.broadcast %cst_7 : f32 to vector<8x1664xf32>
      %19 = arith.maximumf %5, %18 : vector<8x1664xf32>
      %20 = math.absf %5 : vector<8x1664xf32>
      %cst_8 = arith.constant 0.000000e+00 : f32
      %21 = vector.broadcast %cst_8 : f32 to vector<8x1664xf32>
      %22 = arith.subf %21, %20 : vector<8x1664xf32>
      %23 = math.exp %22 : vector<8x1664xf32>
      %24 = math.log1p %23 : vector<8x1664xf32>
      %25 = arith.addf %19, %24 : vector<8x1664xf32>
      %26 = arith.select %17, %25, %5 : vector<8x1664xi1>, vector<8x1664xf32>
      %c0_9 = arith.constant 0 : index
      %c0_10 = arith.constant 0 : index
      %27 = vector.load %arg5[%c0_9, %c0_10] : memref<8x1664xf32, #tpu.memory_space<vmem>>, vector<8x1664xf32>
      tpu.vector_store %arg5[%c0_9, %c0_10], %26 {strides = array<i32>} : memref<8x1664xf32, #tpu.memory_space<vmem>>, vector<8x1664xf32>,
    } else {
    }
    %true = arith.constant true
    %10 = arith.xori %7, %true : i1
    %11 = arith.extui %10 : i1 to i32
    %c0_i32_5 = arith.constant 0 : i32
    %12 = arith.cmpi ne, %11, %c0_i32_5 : i32
    scf.if %12 {
      %c0_6 = arith.constant 0 : index
      %c0_7 = arith.constant 0 : index
      %13 = vector.load %arg5[%c0_6, %c0_7] : memref<8x1664xf32, #tpu.memory_space<vmem>>, vector<8x1664xf32>
      tpu.vector_store %arg5[%c0_6, %c0_7], %5 {strides = array<i32>} : memref<8x1664xf32, #tpu.memory_space<vmem>>, vector<8x1664xf32>,
    } else {
    }
    return
  }
  func.func @transform_0(%arg0: i32, %arg1: i32) -> (i32, i32) {
    %c0_i32 = arith.constant 0 : i32
    %c0_i32_0 = arith.constant 0 : i32
    return %arg1, %c0_i32 : i32, i32
  }
  func.func @transform_1(%arg0: i32, %arg1: i32) -> (i32, i32) {
    %c0_i32 = arith.constant 0 : i32
    %c0_i32_0 = arith.constant 0 : i32
    return %c0_i32, %arg0 : i32, i32
  }
  func.func @transform_2(%arg0: i32, %arg1: i32) -> (i32, i32) {
    %c0_i32 = arith.constant 0 : i32
    %c0_i32_0 = arith.constant 0 : i32
    return %c0_i32, %arg0 : i32, i32
  }
  func.func @transform_3(%arg0: i32, %arg1: i32) -> (i32, i32) {
    %c0_i32 = arith.constant 0 : i32
    return %arg1, %arg0 : i32, i32
  }
}

</mosaic_0001>

<bundles_post_ra>
// kernel: low_rank_mvg_head_forward.1
= control target key start
LH: loop header
LB: loop body
LE: loop exit
PB: predicated region body
PF: predicated region fallthrough
CT: control target
= control target key end

     0   :  { %8 = vsyncpa [#allocation3], 0  ;;  %s1265_s0 = inlined_call_operand.hbm [shape: f32[8,32], index: 0, kind: input, shape index: {}]   ;;  %s1266_s1 = inlined_call_operand.hbm [shape: f32[32,1664], index: 1, kind: input, shape index: {}]   ;;  %s1267_s2 = inlined_call_operand.hbm [shape: f32[1,1664], index: 2, kind: input, shape index: {}]   ;;  %s1268_s3 = inlined_call_operand.vmem [shape: f32[8,1664], index: 3, kind: output, shape index: {}]  }
   0x1   :  { %9 = vsyncpa [#allocation5], 0  ;;  %s1122_s12 = smov [#allocation4]   ;;  %s1052_s16 = scalar_lea.hbm %s1266_s1, 6656 }
   0x2   :  { %s25_s13 = sshll.u32 %s1122_s12, 4  ;;  %p1053_p0 = scmp.ne.s32.totalorder %s1266_s1, %s1052_s16  ;;  %s26_s13 = int_to_ptr.vmem [resolvable:$true] %s25_s13 }
   0x3   :  { %p1056_p1 = scmp.lt.u32.totalorder %s1052_s16, %s1266_s1 }
   0x5   :  { %p1058_p2 = pnand %p1056_p1, %p1053_p0 }
   0x7   :  { %1061 = shalt.err (!%p1058_p2)
}
   0x8   :  { %s1062_s21 = scalar_lea.vmem %s26_s13, 6656  ;;  %p1067_p4 = scmp.lt.s32.totalorder %s26_s13, %s26_s13 }
   0x9   :  { %p1063_p3 = scmp.ne.s32.totalorder %s26_s13, %s1062_s21  ;;  %p1068_p5 = scmp.lt.s32.totalorder %s1062_s21, %s1062_s21 }
   0xb   :  { %p1069_p6 = por %p1068_p5, %p1067_p4 }
   0xd   :  { %p1070_p7 = pnand %p1069_p6, %p1063_p3 }
   0xf   :  { %1073 = shalt.err (!%p1070_p7)
}
  0x10   :  { %s1123_s22 = smov 1664   ;;  %s1124_s23 = smov 104  }
  0x11   :  { %31 = dma.hbm_to_vmem [thread:$0]  %s1266_s1, 6656, %s26_s13, [#allocation5], %s1123_s22, %s1123_s22, %s1124_s23  }
  0x12   :  { %s1125_s26 = smov [#allocation2]   ;;  %s1126_s28 = smov [#allocation6]  }
  0x13   :  { %s16_s27 = sshll.u32 %s1125_s26, 4  ;;  %s38_s29 = sshll.u32 %s1126_s28, 4  ;;  %s17_s27 = int_to_ptr.vmem [resolvable:$true] %s16_s27  ;;  %s39_s29 = int_to_ptr.vmem [resolvable:$true] %s38_s29 }
  0x14   :  { %s1074_s5 = scalar_lea.hbm %s1265_s0, 128 }
  0x15   :  { %p1075_p8 = scmp.ne.s32.totalorder %s1265_s0, %s1074_s5  ;;  %p1078_p9 = scmp.lt.u32.totalorder %s1074_s5, %s1265_s0 }
  0x17   :  { %p1080_p10 = pnand %p1078_p9, %p1075_p8 }
  0x19   :  { %1083 = shalt.err (!%p1080_p10)
}
  0x1a   :  { %s1084_s1 = scalar_lea.vmem %s17_s27, 128  ;;  %p1089_p12 = scmp.lt.s32.totalorder %s17_s27, %s17_s27 }
  0x1b   :  { %p1085_p11 = scmp.ne.s32.totalorder %s17_s27, %s1084_s1  ;;  %p1090_p13 = scmp.lt.s32.totalorder %s1084_s1, %s1084_s1 }
  0x1d   :  { %p1091_p0 = por %p1090_p13, %p1089_p12 }
  0x1f   :  { %p1092_p1 = pnand %p1091_p0, %p1085_p11 }
  0x21   :  { %1095 = shalt.err (!%p1092_p1)
}
  0x22   :  { %19 = dma.hbm_to_vmem [thread:$0]  %s1265_s0, 128, %s17_s27, [#allocation3]  }
  0x23   :  { %s1096_s14 = scalar_lea.hbm %s1267_s2, 208 }
  0x24   :  { %p1097_p2 = scmp.ne.s32.totalorder %s1267_s2, %s1096_s14  ;;  %p1100_p3 = scmp.lt.u32.totalorder %s1096_s14, %s1267_s2 }
  0x26   :  { %p1102_p4 = pnand %p1100_p3, %p1097_p2 }
  0x28   :  { %1105 = shalt.err (!%p1102_p4)
}
  0x29   :  { %s1106_s19 = scalar_lea.vmem %s39_s29, 208  ;;  %s1110_s20 = scalar_lea.vmem %s39_s29, 224 }
  0x2a   :  { %p1107_p5 = scmp.ne.s32.totalorder %s39_s29, %s1106_s19  ;;  %p1111_p6 = scmp.lt.s32.totalorder %s39_s29, %s39_s29 }
  0x2b   :  { %p1112_p7 = scmp.lt.s32.totalorder %s1110_s20, %s1106_s19 }
  0x2d   :  { %p1113_p8 = por %p1112_p7, %p1111_p6 }
  0x2f   :  { %p1114_p9 = pnand %p1113_p8, %p1107_p5 }
  0x31   :  { %1117 = shalt.err (!%p1114_p9)
}
  0x32   :  { %41 = dma.hbm_to_vmem [thread:$0]  %s1267_s2, 208, %s39_s29, [#allocation5]  }
  0x33   :  { %1118 = dma.done.wait [#allocation3], 128  }
  0x34   :  { %1119 = vsyncadd [#allocation3], 4294967168 }
  0x35   :  { %1120 = dma.done.wait [#allocation5], 6864  }
  0x36   :  { %1121 = vsyncadd [#allocation5], 4294960432  ;;  %v1127_v0 = vmov 0.0   ;;  %v53_v1 = vld [vmem:[#allocation4 + $0x8] sm:$0xff]  ;;  %v66_v2 = vld [vmem:[#allocation4 + $0x70] sm:$0xff]  ;;  %vm173_vm0 = vcmask 261120  }
  0x37   :  { %241 = vmatprep.mubr.f32.mxu0 %v1127_v0  ;;  %312 = vmatprep.mubr.f32.mxu1 %v1127_v0  ;;  %v52_v3 = vld [vmem:[#allocation4] sm:$0xff]  ;;  %v986_v4 = vpack.c.bf16 %v66_v2, %v53_v1  ;;  %v65_v5 = vld [vmem:[#allocation4 + $0x68] sm:$0xff]  ;;  %v79_v6 = vld [vmem:[#allocation4 + $0xd8] sm:$0xff]  ;;  %vm1129_vm1 = vmmov 0  }
  0x38   :  { %v92_v7 = vld [vmem:[#allocation4 + $0x140] sm:$0xff]  ;;  %v988_v8 = vpack.c.bf16 %v65_v5, %v52_v3  ;;  %v78_v10 = vld [vmem:[#allocation4 + $0xd0] sm:$0xff]  ;;  %v91_v11 = vld [vmem:[#allocation4 + $0x138] sm:$0xff] }
  0x39   :  { %v990_v9 = vpack.c.bf16 %v92_v7, %v79_v6  ;;  %987 = vmatprep.subr.bf16.mxu0 %v986_v4  ;;  %v55_v12 = vld [vmem:[#allocation4 + $0x18] sm:$0xff]  ;;  %v68_v13 = vld [vmem:[#allocation4 + $0x80] sm:$0xff]  ;;  %v54_v14 = vld [vmem:[#allocation4 + $0x10] sm:$0xff]  ;;  %v992_v15 = vpack.c.bf16 %v91_v11, %v78_v10 }
  0x3a   :  { %989 = vmatpush1.bf16.msra.mxu0 %v988_v8  ;;  %v994_v16 = vpack.c.bf16 %v68_v13, %v55_v12  ;;  %v67_v17 = vld [vmem:[#allocation4 + $0x78] sm:$0xff]  ;;  %v57_v18 = vld [vmem:[#allocation4 + $0x28] sm:$0xff]  ;;  %v70_v19 = vld [vmem:[#allocation4 + $0x90] sm:$0xff] }
  0x3b   :  { %991 = vmatprep.subr.bf16.mxu0 %v990_v9  ;;  %v996_v20 = vpack.c.bf16 %v67_v17, %v54_v14  ;;  %v1002_v21 = vpack.c.bf16 %v70_v19, %v57_v18  ;;  %v56_v22 = vld [vmem:[#allocation4 + $0x20] sm:$0xff]  ;;  %v69_v23 = vld [vmem:[#allocation4 + $0x88] sm:$0xff]  ;;  %v94_v25 = vld [vmem:[#allocation4 + $0x150] sm:$0xff]  ;;  %v1128_v14 = vmov 0.0|0.0   ;;  %v108_v18 = vlaneseq }
  0x3c   :  { %v81_v24 = vld [vmem:[#allocation4 + $0xe8] sm:$0xff]  ;;  %995 = vmatprep.subr.bf16.mxu1 %v994_v16  ;;  %v80_v26 = vld [vmem:[#allocation4 + $0xe0] sm:$0xff]  ;;  %v1188_v28 = vld [vmem:[#allocation2] sm:$0xff]  ;;  %v1004_v33 = vpack.c.bf16 %v69_v23, %v56_v22 }
  0x3d   :  { %v93_v27 = vld [vmem:[#allocation4 + $0x148] sm:$0xff]  ;;  %997 = vmatpush1.bf16.msra.mxu1 %v996_v20  ;;  %v998_v29 = vpack.c.bf16 %v94_v25, %v81_v24  ;;  %v83_v31 = vld [vmem:[#allocation4 + $0xf8] sm:$0xff]  ;;  %v96_v32 = vld [vmem:[#allocation4 + $0x160] sm:$0xff]  ;;  %v1210_v19 = vshrl.u32 %v108_v18, 7 }
  0x3e   :  { %v1000_v30 = vpack.c.bf16 %v93_v27, %v80_v26  ;;  %993 = vmatpush1.bf16.msra.mxu0 %v992_v15  ;;  %v82_v34 = vld [vmem:[#allocation4 + $0xf0] sm:$0xff]  ;;  %v59_v35 = vld [vmem:[#allocation4 + $0x38] sm:$0xff]  ;;  %v72_v36 = vld [vmem:[#allocation4 + $0xa0] sm:$0xff]  ;;  %v1006_v37 = vpack.c.bf16 %v96_v32, %v83_v31 }
  0x3f   :  { %1003 = vmatprep.subr.bf16.mxu0 %v1002_v21  ;;  %999 = vmatprep.subr.bf16.mxu1 %v998_v29  ;;  %v95_v38 = vld [vmem:[#allocation4 + $0x158] sm:$0xff]  ;;  %v1010_v39 = vpack.c.bf16 %v72_v36, %v59_v35  ;;  %v58_v40 = vld [vmem:[#allocation4 + $0x30] sm:$0xff]  ;;  %v61_v42 = vld [vmem:[#allocation4 + $0x48] sm:$0xff]  ;;  %v110_v20 = vsub.s32 0, %v1210_v19  ;;  %v114_v22 = vsub.s32 1, %v1210_v19  ;;  %v118_v23 = vsub.s32 2, %v1210_v19 }
  0x40   :  { %v71_v41 = vld [vmem:[#allocation4 + $0x98] sm:$0xff]  ;;  %v74_v43 = vld [vmem:[#allocation4 + $0xb0] sm:$0xff]  ;;  %v85_v45 = vld [vmem:[#allocation4 + $0x108] sm:$0xff]  ;;  %v1008_v47 = vpack.c.bf16 %v95_v38, %v82_v34  ;;  %v122_v24 = vsub.s32 3, %v1210_v19  ;;  %v126_v31 = vsub.s32 4, %v1210_v19  ;;  %v134_v38 = vsub.s32 6, %v1210_v19 }
  0x41   :  { %963 = vmatmul.mubr.msk.f32.vlgmr.msra.gmra.mrb[0].mxu0 %vm173_vm0, %v1188_v28  ;;  %1001 = vmatpush1.bf16.msra.mxu1 %v1000_v30  ;;  %v1012_v44 = vpack.c.bf16 %v71_v41, %v58_v40  ;;  %v98_v46 = vld [vmem:[#allocation4 + $0x170] sm:$0xff]  ;;  %v84_v49 = vld [vmem:[#allocation4 + $0x100] sm:$0xff]  ;;  %v97_v50 = vld [vmem:[#allocation4 + $0x168] sm:$0xff]  ;;  %v1018_v51 = vpack.c.bf16 %v74_v43, %v61_v42  ;;  %v138_v42 = vsub.s32 7, %v1210_v19 }
  0x42   :  { %1005 = vmatpush1.bf16.msra.mxu0 %v1004_v33  ;;  %1011 = vmatprep.subr.bf16.mxu1 %v1010_v39  ;;  %v1014_v48 = vpack.c.bf16 %v98_v46, %v85_v45  ;;  %v60_v52 = vld [vmem:[#allocation4 + $0x40] sm:$0xff]  ;;  %v73_v53 = vld [vmem:[#allocation4 + $0xa8] sm:$0xff]  ;;  %v63_v54 = vld [vmem:[#allocation4 + $0x58] sm:$0xff]  ;;  %v1016_v58 = vpack.c.bf16 %v97_v50, %v84_v49  ;;  %v130_v33 = vsub.s32 5, %v1210_v19 }
  0x43   :  { %1007 = vmatprep.subr.bf16.mxu0 %v1006_v37  ;;  %383 = vmatprep.mubr.f32.mxu0 %v1127_v0  ;;  %v87_v55 = vld [vmem:[#allocation4 + $0x118] sm:$0xff]  ;;  %v100_v56 = vld [vmem:[#allocation4 + $0x180] sm:$0xff]  ;;  %v1020_v59 = vpack.c.bf16 %v73_v53, %v60_v52  ;;  %v86_v60 = vld [vmem:[#allocation4 + $0x110] sm:$0xff] }
  0x44   :  { %964 = vmatmul.mubr.msk.f32.vlgmr.msra.gmra.mrb[0].mxu1 %vm173_vm0, %v1188_v28  ;;  %v76_v57 = vld [vmem:[#allocation4 + $0xc0] sm:$0xff]  ;;  %v62_v62 = vld [vmem:[#allocation4 + $0x50] sm:$0xff]  ;;  %v75_v63 = vld [vmem:[#allocation4 + $0xb8] sm:$0xff]  ;;  %v1022_v1 = vpack.c.bf16 %v100_v56, %v87_v55 }
  0x45   :  { %1013 = vmatpush1.bf16.msra.mxu1 %v1012_v44  ;;  %454 = vmatprep.mubr.f32.mxu1 %v1127_v0  ;;  %v1026_v61 = vpack.c.bf16 %v76_v57, %v63_v54  ;;  %v99_v2 = vld [vmem:[#allocation4 + $0x178] sm:$0xff]  ;;  %v89_v3 = vld [vmem:[#allocation4 + $0x128] sm:$0xff]  ;;  %v102_v4 = vld [vmem:[#allocation4 + $0x190] sm:$0xff]  ;;  %v1028_v5 = vpack.c.bf16 %v75_v63, %v62_v62 }
  0x46   :  { %1009 = vmatpush1.bf16.msra.mxu0 %v1008_v47  ;;  %1015 = vmatprep.subr.bf16.mxu1 %v1014_v48  ;;  %v1024_v6 = vpack.c.bf16 %v99_v2, %v86_v60  ;;  %v1030_v7 = vpack.c.bf16 %v102_v4, %v89_v3  ;;  %v88_v8 = vld [vmem:[#allocation4 + $0x120] sm:$0xff]  ;;  %v101_v9 = vld [vmem:[#allocation4 + $0x188] sm:$0xff]  ;;  %v90_v15 = vld [vmem:[#allocation4 + $0x130] sm:$0xff] }
  0x47   :  { %1019 = vmatprep.subr.bf16.mxu0 %v1018_v51  ;;  %v64_v10 = vld [vmem:[#allocation4 + $0x60] sm:$0xff]  ;;  %v77_v11 = vld [vmem:[#allocation4 + $0xc8] sm:$0xff]  ;;  %v1032_v12 = vpack.c.bf16 %v101_v9, %v88_v8  ;;  %v103_v16 = vld [vmem:[#allocation4 + $0x198] sm:$0xff] }
  0x48   :  { %v1035_v13 = vpack.c.bf16 %v77_v11, %v64_v10  ;;  %v1038_v17 = vpack.c.bf16 %v103_v16, %v90_v15  ;;  %v104_v21 = vld [vmem:[#allocation6] sm:$0xff]  ;;  %v105_v51 = vld [vmem:[#allocation6 + $0x8] sm:$0x1f] }
  0x49   :  { %965 = vmatmul.mubr.msk.f32.vlgmr.msra.gmra.mrb[2].mxu0 %vm173_vm0, %v1188_v28  ;;  %1017 = vmatpush1.bf16.msra.mxu1 %v1016_v58  ;;  %v115_v25 = vrot.slane %v104_v21, %v114_v22  ;;  %v119_v27 = vrot.slane %v104_v21, %v118_v23  ;;  %v123_v30 = vrot.slane %v104_v21, %v122_v24 }
  0x4a   :  { %1021 = vmatpush1.bf16.msra.mxu0 %v1020_v59  ;;  %1027 = vmatprep.subr.bf16.mxu1 %v1026_v61  ;;  %v127_v41 = vrot.slane %v104_v21, %v126_v31  ;;  %v131_v43 = vrot.slane %v104_v21, %v130_v33  ;;  %v135_v46 = vrot.slane %v104_v21, %v134_v38 }
  0x4b   :  { %1023 = vmatprep.subr.bf16.mxu0 %v1022_v1  ;;  %525 = vmatprep.mubr.f32.mxu0 %v1127_v0  ;;  %v139_v49 = vrot.slane %v104_v21, %v138_v42  ;;  %v143_v56 = vrot.slane %v105_v51, %v110_v20  ;;  %v147_v57 = vrot.slane %v105_v51, %v114_v22 }
  0x4c   :  { %966 = vmatmul.mubr.msk.f32.vlgmr.msra.gmra.mrb[2].mxu1 %vm173_vm0, %v1188_v28  ;;  %v151_v59 = vrot.slane %v105_v51, %v118_v23  ;;  %v155_v62 = vrot.slane %v105_v51, %v122_v24 }
  0x4d   :  { %1029 = vmatpush1.bf16.msra.mxu1 %v1028_v5  ;;  %596 = vmatprep.mubr.f32.mxu1 %v1127_v0 }
  0x4e   :  { %1025 = vmatpush1.bf16.msra.mxu0 %v1024_v6  ;;  %1031 = vmatprep.subr.bf16.mxu1 %v1030_v7  ;;  %v159_v7 = vrot.slane %v105_v51, %v126_v31 }
  0x4f   :  { %1034 = vmatprep.subr.bf16.mxu0 %v1128_v14 }
  0x51   :  { %967 = vmatmul.mubr.msk.f32.vlgmr.msra.gmra.mrb[4].mxu0 %vm173_vm0, %v1188_v28  ;;  %1033 = vmatpush1.bf16.msra.mxu1 %v1032_v12 }
  0x52   :  { %1036 = vmatpush3.bf16.msra.mxu0 %v1035_v13  ;;  %983 = vmatprep.mubr.msk.f32.mxu0 %vm1129_vm1, %v1127_v0  ;;  %v111_v0 = vrot.slane %v104_v21, %v110_v20 }
  0x53   :  { %1037 = vmatprep.subr.bf16.mxu0 %v1128_v14  ;;  %v679_v14 = vand.u32 127, %v108_v18 }
  0x54   :  { %968 = vmatmul.mubr.msk.f32.vlgmr.msra.gmra.mrb[4].mxu1 %vm173_vm0, %v1188_v28 }
  0x55   :  { %vm706_vm3 = vcmp.lt.s32.totalorder %v679_v14, 96 }
  0x56   :  { %1039 = vmatpush3.bf16.msra.mxu0 %v1038_v17 }
  0x59   :  { %984 = vmatmul.mubr.msk.f32.vlgmr.msra.gmra.mrb[6].mxu0 %vm173_vm0, %v1188_v28 }
 0x114   :  { %v243_v26 = vpop.f32.mrb[0].mxu0 }
 0x115   :  { %v1216_v29 = vadd.f32 %v243_v26, %v111_v0  ;;  %v245_v28 = vpop.f32.mrb[1].mxu0 }
 0x116   :  { %v246_v32 = vadd.f32 %v245_v28, %v115_v25 }
 0x117   :  { %v732_v34 = vand.u32 2147483647, %v1216_v29  ;;  %v314_v35 = vpop.f32.mrb[0].mxu1  ;;  %v719_v19 = vmax.f32 %v1216_v29, 0.0 }
 0x118   :  { %928 = vst [vmem:[%s1268_s3 + $0x8] sm:$0xff] %v246_v32  ;;  %v315_v36 = vadd.f32 %v314_v35, %v119_v27  ;;  %v316_v37 = vpop.f32.mrb[1].mxu1 }
 0x119   :  { %v745_v39 = vsub.f32 0.0, %v732_v34  ;;  %v317_v40 = vadd.f32 %v316_v37, %v123_v30 }
 0x11a   :  { %929 = vst [vmem:[%s1268_s3 + $0x10] sm:$0xff] %v315_v36 }
 0x11b   :  { %v758_v44 = vmul.f32 1.442695, %v745_v39  ;;  %930 = vst [vmem:[%s1268_s3 + $0x18] sm:$0xff] %v317_v40 }
 0x11c   :  { %v385_v45 = vpop.f32.mrb[2].mxu0 }
 0x11d   :  { %1048 = vpow2.f32 %v758_v44  ;;  %v386_v47 = vadd.f32 %v385_v45, %v127_v41  ;;  %v387_v48 = vpop.f32.mrb[3].mxu0 }
 0x11e   :  { %v388_v50 = vadd.f32 %v387_v48, %v131_v43 }
 0x11f   :  { %931 = vst [vmem:[%s1268_s3 + $0x20] sm:$0xff] %v386_v47  ;;  %v456_v52 = vpop.f32.mrb[2].mxu1 }
 0x120   :  { %932 = vst [vmem:[%s1268_s3 + $0x28] sm:$0xff] %v388_v50  ;;  %v457_v53 = vadd.f32 %v456_v52, %v135_v46  ;;  %v458_v54 = vpop.f32.mrb[3].mxu1 }
 0x121   :  { %v459_v55 = vadd.f32 %v458_v54, %v139_v49 }
 0x122   :  { %933 = vst [vmem:[%s1268_s3 + $0x30] sm:$0xff] %v457_v53 }
 0x123   :  { %934 = vst [vmem:[%s1268_s3 + $0x38] sm:$0xff] %v459_v55 }
 0x124   :  { %v527_v58 = vpop.f32.mrb[4].mxu0 }
 0x125   :  { %v528_v60 = vadd.f32 %v527_v58, %v143_v56  ;;  %v529_v61 = vpop.f32.mrb[5].mxu0 }
 0x126   :  { %v530_v63 = vadd.f32 %v529_v61, %v147_v57 }
 0x127   :  { %v1049_v1 = vpop.eup %1048  ;;  %935 = vst [vmem:[%s1268_s3 + $0x40] sm:$0xff] %v528_v60  ;;  %v598_v2 = vpop.f32.mrb[4].mxu1 }
 0x128   :  { %v784_v3 = vadd.f32 1.0, %v1049_v1  ;;  %936 = vst [vmem:[%s1268_s3 + $0x48] sm:$0xff] %v530_v63  ;;  %v599_v4 = vadd.f32 %v598_v2, %v151_v59  ;;  %v600_v5 = vpop.f32.mrb[5].mxu1  ;;  %v787_v9 = vmul.f32 -0.5, %v1049_v1  ;;  %v790_v13 = vand.u32 2147483647, %v1049_v1 }
 0x129   :  { %v601_v6 = vadd.f32 %v600_v5, %v155_v62 }
 0x12a   :  { %1050 = vlog2.f32 %v784_v3  ;;  %937 = vst [vmem:[%s1268_s3 + $0x50] sm:$0xff] %v599_v4  ;;  %v788_v12 = vadd.f32 1.0, %v787_v9  ;;  %vm791_vm2 = vcmp.lt.f32.partialorder %v790_v13, 0.0004427343 }
 0x12b   :  { %938 = vst [vmem:[%s1268_s3 + $0x58] sm:$0xff] %v601_v6 }
 0x12c   :  { %v669_v8 = vpop.f32.mrb[6].mxu0  ;;  %v789_v17 = vmul.f32 %v1049_v1, %v788_v12 }
 0x12d   :  { %v670_v10 = vadd.f32 %v669_v8, %v159_v7  ;;  %v985_v11 = vpop.f32.mrb[7].mxu0 }
 0x12f   :  { %939 = vst [vmem:[%s1268_s3 + $0x60] sm:$0xff] %v670_v10 }
 0x134   :  { %v1051_v15 = vpop.eup %1050 }
 0x135   :  { %v786_v16 = vmul.f32 0.6931472, %v1051_v15 }
 0x137   :  { %v792_v20 = vsel %vm791_vm2, %v789_v17, %v786_v16 }
 0x138   :  { %v901_v21 = vadd.f32 %v792_v20, %v719_v19 }
 0x13a   :  { %v914_v22 = vsel %vm706_vm3, %v901_v21, %v1216_v29 }
 0x13b   :  { %927 = vst [vmem:[%s1268_s3] sm:$0xff] %v914_v22 }
 0x13c   :  { %961 = vsyncpa [#allocation3], 1 }
 0x13d   :  { %962 = vsyncpa [#allocation5], 1 }

</bundles_post_ra>
